<compile_context>
chip_gen: v7x
topology: tpu7x:2x2x1
jax: 0.10.0
libtpu: 0.0.40
codegen_flags: <defaults>
</compile_context>

<pallas_src>
import jax
import jax.numpy as jnp
from jax.experimental import pallas as pl
from jax.experimental.pallas import tpu as pltpu


def _decoder_kernel(gl_ref, df_ref, st_ref, w_ref, b_ref, out_ref, x_ref):
    # gl_ref : (L, R, D)   last growth step per layer, broadcast over horizon (R = B*T)
    # df_ref : (L, R, D)   cumulative damping factors, per-head expanded, tiled over batch
    # st_ref : (L, R, D)   season tail per layer, rows flattened
    # w_ref  : (D, Cp)     pred weight (transposed, lane-padded to Cp)
    # b_ref  : (1, Cp)     pred bias   (lane-padded)
    # out_ref: (2R, Cp)    rows [0:R] = growth prediction, rows [R:2R] = season prediction
    # x_ref  : (2R, D)     VMEM scratch holding the fused GEMM LHS
    R = st_ref.shape[1]

    # Vectorized layer reductions (single accumulator each, no unrolled temps).
    growth_repr = jnp.sum(gl_ref[...] * df_ref[...], axis=0)   # (R, D) f32
    season_repr = jnp.sum(st_ref[...], axis=0)                 # (R, D) f32

    # Stack growth rows above season rows so the shared-weight projection is a
    # single MXU pass over (2R, D) @ (D, Cp).
    x_ref[:R, :] = growth_repr
    x_ref[R:, :] = season_repr

    out_ref[...] = (
        jnp.dot(x_ref[...], w_ref[...], preferred_element_type=jnp.float32)
        + b_ref[...]
    )


def decoder_forward(growths, seasons, damping_params, w_pred, b_pred, *, nhead, pred_len):
    """Pallas implementation of Decoder.forward."""
    L = len(growths)
    B, _, D = growths[0].shape
    C = w_pred.shape[0]
    T = pred_len
    R = B * T
    dk = D // nhead
    CP = ((C + 127) // 128) * 128          # lane-dense output width

    # ---- wrapper-side glue (tiny tensors, plain XLA ops) --------------------
    # Last growth step per layer, broadcast over the prediction horizon, rows flattened.
    growth_last = jnp.stack([g[:, -1, :] for g in growths], axis=0)            # (L, B, D)
    gl_flat = jnp.broadcast_to(
        growth_last[:, :, None, :], (L, B, T, D)).reshape(L, R, D)             # (L, R, D)

    # Season tail per layer, rows flattened.
    season_flat = jnp.stack(
        [s[:, -T:, :] for s in seasons], axis=0).reshape(L, R, D)              # (L, R, D)

    # Parameter-derived cumulative damping factors (tiny (T, nhead) tables),
    # per-head expanded to D and tiled over batch to match the flattened rows.
    powers = jnp.arange(1, T + 1, dtype=jnp.float32).reshape(T, 1)
    growth_dampings = []
    df_layers = []
    for p in damping_params:
        f = jnp.cumsum(jax.nn.sigmoid(p) ** powers, axis=0)                    # (T, H)
        growth_dampings.append(f)
        f_d = jnp.repeat(f, dk, axis=1)                                        # (T, D)
        df_layers.append(jnp.tile(f_d, (B, 1)))                                # (R, D)
    df_flat = jnp.stack(df_layers, axis=0)                                     # (L, R, D)

    # pred weight transposed and zero-padded so stores are unmasked full lanes.
    w_pad = jnp.zeros((D, CP), jnp.float32).at[:, :C].set(w_pred.T.astype(jnp.float32))
    b_pad = jnp.zeros((1, CP), jnp.float32).at[:, :C].set(b_pred.astype(jnp.float32))

    # ---- single-step Pallas call (shapes are tiny; one grid step is optimal) ----
    grid_spec = pltpu.PrefetchScalarGridSpec(
        num_scalar_prefetch=0,
        grid=(1,),
        in_specs=[
            pl.BlockSpec((L, R, D), lambda i: (0, 0, 0)),   # gl_flat
            pl.BlockSpec((L, R, D), lambda i: (0, 0, 0)),   # df_flat
            pl.BlockSpec((L, R, D), lambda i: (0, 0, 0)),   # season_flat
            pl.BlockSpec((D, CP), lambda i: (0, 0)),        # w_pad
            pl.BlockSpec((1, CP), lambda i: (0, 0)),        # b_pad
        ],
        out_specs=pl.BlockSpec((2 * R, CP), lambda i: (0, 0)),
        scratch_shapes=[pltpu.VMEM((2 * R, D), jnp.float32)],
    )

    out = pl.pallas_call(
        _decoder_kernel,
        out_shape=jax.ShapeDtypeStruct((2 * R, CP), jnp.float32),
        grid_spec=grid_spec,
        compiler_params=pltpu.CompilerParams(dimension_semantics=("arbitrary",)),
    )(gl_flat, df_flat, season_flat, w_pad, b_pad)

    gpred = out[:R, :C].reshape(B, T, C)
    spred = out[R:, :C].reshape(B, T, C)
    return gpred, spred, growth_dampings


def _reference(growths, seasons, damping_params, w_pred, b_pred, *, nhead, pred_len):
    """Pure-JAX reference mirroring the PyTorch forward (eval mode)."""
    T = pred_len
    powers = jnp.arange(1, T + 1, dtype=jnp.float32).reshape(T, 1)
    growth_repr = 0.0
    season_repr = 0.0
    for g, s, p in zip(growths, seasons, damping_params):
        B, _, D = g.shape
        dk = D // nhead
        f = jnp.cumsum(jax.nn.sigmoid(p) ** powers, axis=0)           # (T, H)
        gh = jnp.broadcast_to(g[:, -1:, :], (B, T, D)).reshape(B, T, nhead, dk)
        gh = gh * f[None, :, :, None]
        growth_repr = growth_repr + gh.reshape(B, T, D)
        season_repr = season_repr + s[:, -T:, :]
    gp = growth_repr @ w_pred.T + b_pred
    sp = season_repr @ w_pred.T + b_pred
    return gp, sp


if __name__ == "__main__":
    # Small shapes implied by the module: two decoder layers.
    B, SEQ, D, H, C, T, L = 2, 12, 32, 4, 4, 8, 2

    key = jax.random.PRNGKey(0)
    keys = jax.random.split(key, 2 * L + L + 2)

    growths = [jax.random.normal(keys[i], (B, SEQ, D), jnp.float32) for i in range(L)]
    seasons = [jax.random.normal(keys[L + i], (B, SEQ, D), jnp.float32) for i in range(L)]
    # DampingLayer._damping_factor params: one (1, nhead) per layer.
    damping_params = [jax.random.normal(keys[2 * L + i], (1, H), jnp.float32) for i in range(L)]
    # pred = nn.Linear(d_model, c_out): weight (c_out, d_model), bias (c_out,).
    w_pred = jax.random.normal(keys[-2], (C, D), jnp.float32) * 0.1
    b_pred = jax.random.normal(keys[-1], (C,), jnp.float32) * 0.1

    gpred, spred, growth_dampings = decoder_forward(
        growths, seasons, damping_params, w_pred, b_pred, nhead=H, pred_len=T)
    jax.block_until_ready(gpred)
    jax.block_until_ready(spred)

    gref, sref = _reference(growths, seasons, damping_params, w_pred, b_pred,
                            nhead=H, pred_len=T)
    assert gpred.shape == (B, T, C) and spred.shape == (B, T, C)
    assert len(growth_dampings) == L and growth_dampings[0].shape == (T, H)
    assert jnp.allclose(gpred, gref, atol=1e-5, rtol=1e-5)
    assert jnp.allclose(spred, sref, atol=1e-5, rtol=1e-5)

    print("KERNEL_OK")
</pallas_src>

<mosaic_0001>
module attributes {stable_mosaic.version = 11 : i64} {
  func.func @_decoder_kernel(%arg0: i32, %arg1: memref<2x16x32xf32, #tpu.memory_space<vmem>>, %arg2: memref<2x16x32xf32, #tpu.memory_space<vmem>>, %arg3: memref<2x16x32xf32, #tpu.memory_space<vmem>>, %arg4: memref<32x128xf32, #tpu.memory_space<vmem>>, %arg5: memref<1x128xf32, #tpu.memory_space<vmem>>, %arg6: memref<32x128xf32, #tpu.memory_space<vmem>>, %arg7: memref<32x32xf32, #tpu.memory_space<vmem>>) attributes {dimension_semantics = [#tpu.dimension_semantics<arbitrary>], iteration_bounds = array<i64: 1>, scalar_prefetch = 0 : i64, scratch_operands = 1 : i64, tpu.core_type = #tpu.core_type<tc>, window_params = [{pipeline_mode = #tpu.pipeline_mode<synchronous>, transform_indices = @transform_0, window_bounds = array<i64: 2, 16, 32>}, {pipeline_mode = #tpu.pipeline_mode<synchronous>, transform_indices = @transform_1, window_bounds = array<i64: 2, 16, 32>}, {pipeline_mode = #tpu.pipeline_mode<synchronous>, transform_indices = @transform_2, window_bounds = array<i64: 2, 16, 32>}, {pipeline_mode = #tpu.pipeline_mode<synchronous>, transform_indices = @transform_3, window_bounds = array<i64: 32, 128>}, {pipeline_mode = #tpu.pipeline_mode<synchronous>, transform_indices = @transform_4, window_bounds = array<i64: 1, 128>}, {pipeline_mode = #tpu.pipeline_mode<synchronous>, transform_indices = @transform_5, window_bounds = array<i64: 32, 128>}]} {
    %c0 = arith.constant 0 : index
    %c0_0 = arith.constant 0 : index
    %c0_1 = arith.constant 0 : index
    %0 = vector.load %arg1[%c0, %c0_0, %c0_1] : memref<2x16x32xf32, #tpu.memory_space<vmem>>, vector<2x16x32xf32>
    %c0_2 = arith.constant 0 : index
    %c0_3 = arith.constant 0 : index
    %c0_4 = arith.constant 0 : index
    %1 = vector.load %arg2[%c0_2, %c0_3, %c0_4] : memref<2x16x32xf32, #tpu.memory_space<vmem>>, vector<2x16x32xf32>
    %2 = arith.mulf %0, %1 : vector<2x16x32xf32>
    %cst = arith.constant dense<0.000000e+00> : vector<16x32xf32>
    %3 = vector.multi_reduction <add>, %2, %cst [0] : vector<2x16x32xf32> to vector<16x32xf32>
    %c0_5 = arith.constant 0 : index
    %c0_6 = arith.constant 0 : index
    %c0_7 = arith.constant 0 : index
    %4 = vector.load %arg3[%c0_5, %c0_6, %c0_7] : memref<2x16x32xf32, #tpu.memory_space<vmem>>, vector<2x16x32xf32>
    %cst_8 = arith.constant dense<0.000000e+00> : vector<16x32xf32>
    %5 = vector.multi_reduction <add>, %4, %cst_8 [0] : vector<2x16x32xf32> to vector<16x32xf32>
    %c0_9 = arith.constant 0 : index
    %c0_10 = arith.constant 0 : index
    %6 = vector.load %arg7[%c0_9, %c0_10] : memref<32x32xf32, #tpu.memory_space<vmem>>, vector<16x32xf32>
    tpu.vector_store %arg7[%c0_9, %c0_10], %3 {strides = array<i32>} : memref<32x32xf32, #tpu.memory_space<vmem>>, vector<16x32xf32>,
    %c16 = arith.constant 16 : index
    %c0_11 = arith.constant 0 : index
    %7 = vector.load %arg7[%c16, %c0_11] : memref<32x32xf32, #tpu.memory_space<vmem>>, vector<16x32xf32>
    tpu.vector_store %arg7[%c16, %c0_11], %5 {strides = array<i32>} : memref<32x32xf32, #tpu.memory_space<vmem>>, vector<16x32xf32>,
    %c0_12 = arith.constant 0 : index
    %c0_13 = arith.constant 0 : index
    %8 = vector.load %arg7[%c0_12, %c0_13] : memref<32x32xf32, #tpu.memory_space<vmem>>, vector<32x32xf32>
    %c0_14 = arith.constant 0 : index
    %c0_15 = arith.constant 0 : index
    %9 = vector.load %arg4[%c0_14, %c0_15] : memref<32x128xf32, #tpu.memory_space<vmem>>, vector<32x128xf32>
    %cst_16 = arith.constant dense<0.000000e+00> : vector<32x128xf32>
    %10 = tpu.matmul %8, %9, %cst_16 {dimension_numbers = #tpu.dot_dimension_numbers<[1], [0], [0], [1], [0, 0, 1, 1], [], []>} : vector<32x32xf32>, vector<32x128xf32>, vector<32x128xf32> -> vector<32x128xf32>
    %c0_17 = arith.constant 0 : index
    %c0_18 = arith.constant 0 : index
    %11 = vector.load %arg5[%c0_17, %c0_18] : memref<1x128xf32, #tpu.memory_space<vmem>>, vector<1x128xf32>
    %12 = vector.broadcast %11 : vector<1x128xf32> to vector<32x128xf32>
    %13 = arith.addf %10, %12 : vector<32x128xf32>
    %c0_19 = arith.constant 0 : index
    %c0_20 = arith.constant 0 : index
    %14 = vector.load %arg6[%c0_19, %c0_20] : memref<32x128xf32, #tpu.memory_space<vmem>>, vector<32x128xf32>
    tpu.vector_store %arg6[%c0_19, %c0_20], %13 {strides = array<i32>} : memref<32x128xf32, #tpu.memory_space<vmem>>, vector<32x128xf32>,
    return
  }
  func.func @transform_0(%arg0: i32) -> (i32, i32, i32) {
    %c0_i32 = arith.constant 0 : i32
    %c0_i32_0 = arith.constant 0 : i32
    %c0_i32_1 = arith.constant 0 : i32
    %c0_i32_2 = arith.constant 0 : i32
    return %c0_i32, %c0_i32_0, %c0_i32_1 : i32, i32, i32
  }
  func.func @transform_1(%arg0: i32) -> (i32, i32, i32) {
    %c0_i32 = arith.constant 0 : i32
    %c0_i32_0 = arith.constant 0 : i32
    %c0_i32_1 = arith.constant 0 : i32
    %c0_i32_2 = arith.constant 0 : i32
    return %c0_i32, %c0_i32_0, %c0_i32_1 : i32, i32, i32
  }
  func.func @transform_2(%arg0: i32) -> (i32, i32, i32) {
    %c0_i32 = arith.constant 0 : i32
    %c0_i32_0 = arith.constant 0 : i32
    %c0_i32_1 = arith.constant 0 : i32
    %c0_i32_2 = arith.constant 0 : i32
    return %c0_i32, %c0_i32_0, %c0_i32_1 : i32, i32, i32
  }
  func.func @transform_3(%arg0: i32) -> (i32, i32) {
    %c0_i32 = arith.constant 0 : i32
    %c0_i32_0 = arith.constant 0 : i32
    %c0_i32_1 = arith.constant 0 : i32
    return %c0_i32, %c0_i32_0 : i32, i32
  }
  func.func @transform_4(%arg0: i32) -> (i32, i32) {
    %c0_i32 = arith.constant 0 : i32
    %c0_i32_0 = arith.constant 0 : i32
    %c0_i32_1 = arith.constant 0 : i32
    return %c0_i32, %c0_i32_0 : i32, i32
  }
  func.func @transform_5(%arg0: i32) -> (i32, i32) {
    %c0_i32 = arith.constant 0 : i32
    %c0_i32_0 = arith.constant 0 : i32
    %c0_i32_1 = arith.constant 0 : i32
    return %c0_i32, %c0_i32_0 : i32, i32
  }
}

</mosaic_0001>

<bundles_post_ra>
// kernel: tpu_custom_call.1
= control target key start
LH: loop header
LB: loop body
LE: loop exit
PB: predicated region body
PF: predicated region fallthrough
CT: control target
= control target key end

     0   :  { %10 = vsyncpa [#allocation4], 0  ;;  %s553_s0 = inlined_call_operand.hbm [shape: f32[2,16,32], index: 0, kind: input, shape index: {}]   ;;  %s554_s1 = inlined_call_operand.hbm [shape: f32[2,16,32], index: 1, kind: input, shape index: {}]   ;;  %s555_s2 = inlined_call_operand.hbm [shape: f32[2,16,32], index: 2, kind: input, shape index: {}]   ;;  %s556_s3 = inlined_call_operand.hbm [shape: f32[32,128], index: 3, kind: input, shape index: {}]   ;;  %s557_s4 = inlined_call_operand.vmem [shape: f32[1,128], index: 4, kind: input, shape index: {}]   ;;  %s558_s5 = inlined_call_operand.hbm [shape: f32[32,128], index: 5, kind: output, shape index: {}]  }
   0x1   :  { %11 = vsyncpa [#allocation7], 0 }
   0x2   :  { %12 = vsyncpa [#allocation10], 0 }
   0x3   :  { %13 = vsyncpa [#allocation5], 0  ;;  %s408_s18 = smov [#allocation6]   ;;  %s409_s20 = smov [#allocation3]  }
   0x4   :  { %s31_s19 = sshll.u32 %s408_s18, 4  ;;  %s19_s21 = sshll.u32 %s409_s20, 4  ;;  %s32_s19 = int_to_ptr.vmem [resolvable:$true] %s31_s19  ;;  %s445_s21 = int_to_ptr.vmem [resolvable:$true] %s19_s21 }
   0x5   :  { %s290_s24 = scalar_lea.hbm %s554_s1, 512 }
   0x6   :  { %p291_p0 = scmp.ne.s32.totalorder %s554_s1, %s290_s24  ;;  %p294_p1 = scmp.lt.u32.totalorder %s290_s24, %s554_s1 }
   0x8   :  { %p296_p2 = pnand %p294_p1, %p291_p0 }
   0xa   :  { %299 = shalt.err (!%p296_p2)
}
   0xb   :  { %s300_s29 = scalar_lea.vmem %s32_s19, 512  ;;  %p305_p4 = scmp.lt.s32.totalorder %s32_s19, %s32_s19 }
   0xc   :  { %p301_p3 = scmp.ne.s32.totalorder %s32_s19, %s300_s29  ;;  %p306_p5 = scmp.lt.s32.totalorder %s300_s29, %s300_s29 }
   0xe   :  { %p307_p6 = por %p306_p5, %p305_p4 }
  0x10   :  { %p308_p7 = pnand %p307_p6, %p301_p3 }
  0x12   :  { %311 = shalt.err (!%p308_p7)
}
  0x13   :  { %s410_s30 = smov 128   ;;  %s411_s6 = smov 8  }
  0x14   :  { %37 = dma.hbm_to_vmem [thread:$0]  %s554_s1, 512, %s32_s19, [#allocation7], %s410_s30, %s410_s30, %s411_s6  }
  0x15   :  { %s312_s11 = scalar_lea.hbm %s553_s0, 512 }
  0x16   :  { %p313_p8 = scmp.ne.s32.totalorder %s553_s0, %s312_s11  ;;  %p316_p9 = scmp.lt.u32.totalorder %s312_s11, %s553_s0 }
  0x18   :  { %p318_p10 = pnand %p316_p9, %p313_p8 }
  0x1a   :  { %321 = shalt.err (!%p318_p10)
}
  0x1b   :  { %s322_s16 = scalar_lea.vmem %s445_s21, 512  ;;  %p327_p12 = scmp.lt.s32.totalorder %s445_s21, %s445_s21 }
  0x1c   :  { %p323_p11 = scmp.ne.s32.totalorder %s445_s21, %s322_s16  ;;  %p328_p13 = scmp.lt.s32.totalorder %s322_s16, %s322_s16 }
  0x1e   :  { %p329_p0 = por %p328_p13, %p327_p12 }
  0x20   :  { %p330_p1 = pnand %p329_p0, %p323_p11 }
  0x22   :  { %333 = shalt.err (!%p330_p1)
}
  0x23   :  { %25 = dma.hbm_to_vmem [thread:$0]  %s553_s0, 512, %s445_s21, [#allocation4], %s410_s30, %s410_s30, %s411_s6  }
  0x24   :  { %s412_s18 = smov [#allocation8]   ;;  %s413_s20 = smov [#allocation9]  }
  0x25   :  { %s43_s19 = sshll.u32 %s412_s18, 4  ;;  %s55_s22 = sshll.u32 %s413_s20, 4  ;;  %s44_s19 = int_to_ptr.vmem [resolvable:$true] %s43_s19  ;;  %s482_s22 = int_to_ptr.vmem [resolvable:$true] %s55_s22 }
  0x26   :  { %s334_s25 = scalar_lea.hbm %s555_s2, 512 }
  0x27   :  { %p335_p2 = scmp.ne.s32.totalorder %s555_s2, %s334_s25  ;;  %p338_p3 = scmp.lt.u32.totalorder %s334_s25, %s555_s2 }
  0x29   :  { %p340_p4 = pnand %p338_p3, %p335_p2 }
  0x2b   :  { %343 = shalt.err (!%p340_p4)
}
  0x2c   :  { %s344_s0 = scalar_lea.vmem %s44_s19, 512  ;;  %p349_p6 = scmp.lt.s32.totalorder %s44_s19, %s44_s19 }
  0x2d   :  { %p345_p5 = scmp.ne.s32.totalorder %s44_s19, %s344_s0  ;;  %p350_p7 = scmp.lt.s32.totalorder %s344_s0, %s344_s0 }
  0x2f   :  { %p351_p8 = por %p350_p7, %p349_p6 }
  0x31   :  { %p352_p9 = pnand %p351_p8, %p345_p5 }
  0x33   :  { %355 = shalt.err (!%p352_p9)
}
  0x34   :  { %49 = dma.hbm_to_vmem [thread:$0]  %s555_s2, 512, %s44_s19, [#allocation7], %s410_s30, %s410_s30, %s411_s6  }
  0x35   :  { %s356_s10 = scalar_lea.hbm %s556_s3, 512 }
  0x36   :  { %p357_p10 = scmp.ne.s32.totalorder %s556_s3, %s356_s10  ;;  %p360_p11 = scmp.lt.u32.totalorder %s356_s10, %s556_s3 }
  0x38   :  { %p362_p12 = pnand %p360_p11, %p357_p10 }
  0x3a   :  { %365 = shalt.err (!%p362_p12)
}
  0x3b   :  { %s366_s15 = scalar_lea.vmem %s482_s22, 512  ;;  %p371_p0 = scmp.lt.s32.totalorder %s482_s22, %s482_s22 }
  0x3c   :  { %p367_p13 = scmp.ne.s32.totalorder %s482_s22, %s366_s15  ;;  %p372_p1 = scmp.lt.s32.totalorder %s366_s15, %s366_s15 }
  0x3e   :  { %p373_p2 = por %p372_p1, %p371_p0 }
  0x40   :  { %p374_p3 = pnand %p373_p2, %p367_p13 }
  0x42   :  { %377 = shalt.err (!%p374_p3)
}
  0x43   :  { %61 = dma.hbm_to_vmem [thread:$0]  %s556_s3, 512, %s482_s22, [#allocation10], %s410_s30, %s410_s30, %s411_s6  }
  0x44   :  { %400 = dma.done.wait [#allocation4], 512  }
  0x45   :  { %401 = vsyncadd [#allocation4], 4294966784 }
  0x46   :  { %402 = dma.done.wait [#allocation7], 1024  }
  0x47   :  { %403 = vsyncadd [#allocation7], 4294966272 }
  0x48   :  { %404 = dma.done.wait [#allocation10], 512  }
  0x49   :  { %405 = vsyncadd [#allocation10], 4294966784  ;;  %vm88_vm0 = vcmask 261120   ;;  %v113_v0 = vld [vmem:[#allocation9] sm:$0xff]  ;;  %v114_v1 = vld [vmem:[#allocation9 + $0x8] sm:$0xff]  ;;  %s414_s17 = smov [#allocation11]  }
  0x4a   :  { %v115_v2 = vld [vmem:[#allocation9 + $0x10] sm:$0xff]  ;;  %v271_v3 = vpack.c.bf16 %v114_v1, %v113_v0  ;;  %v116_v4 = vld [vmem:[#allocation9 + $0x18] sm:$0xff]  ;;  %v95_v5 = vld [vmem:[#allocation8] sm:$0xff]  ;;  %s230_s18 = sshll.u32 %s414_s17, 4  ;;  %s231_s18 = int_to_ptr.vmem [resolvable:$true] %s230_s18 }
  0x4b   :  { %v97_v6 = vld [vmem:[#allocation8 + $0x10] sm:$0xff]  ;;  %v275_v7 = vpack.c.bf16 %v116_v4, %v115_v2  ;;  %v99_v8 = vsel %vm88_vm0, %v95_v5, 0.0  ;;  %v76_v10 = vld [vmem:[#allocation3] sm:$0xff]  ;;  %v96_v16 = vld [vmem:[#allocation8 + $0x8] sm:$0xff]  ;;  %s378_s19 = scalar_lea.vmem %s231_s18, 512  ;;  %p383_p5 = scmp.lt.s32.totalorder %s231_s18, %s231_s18 }
  0x4c   :  { %v100_v9 = vsel %vm88_vm0, %v97_v6, 0.0  ;;  %v78_v11 = vld [vmem:[#allocation3 + $0x10] sm:$0xff]  ;;  %v80_v12 = vld [vmem:[#allocation6] sm:$0xff]  ;;  %279 = vmatprep.subr.bf16.mxu1 %v271_v3  ;;  %272 = vmatprep.subr.bf16.mxu0 %v271_v3  ;;  %v98_v17 = vld [vmem:[#allocation8 + $0x18] sm:$0xff]  ;;  %v102_v19 = vsel %vm88_vm0, %v96_v16, 0.0  ;;  %p379_p4 = scmp.ne.s32.totalorder %s231_s18, %s378_s19  ;;  %p384_p6 = scmp.lt.s32.totalorder %s378_s19, %s378_s19 }
  0x4d   :  { %v101_v13 = vadd.f32 %v100_v9, %v99_v8  ;;  %v82_v14 = vld [vmem:[#allocation6 + $0x10] sm:$0xff]  ;;  %v84_v15 = vmul.f32 %v80_v12, %v76_v10  ;;  %281 = vmatpush3.bf16.msra.mxu1 %v271_v3  ;;  %274 = vmatpush3.bf16.msra.mxu0 %v271_v3  ;;  %v103_v20 = vsel %vm88_vm0, %v98_v17, 0.0  ;;  %v77_v21 = vld [vmem:[#allocation3 + $0x8] sm:$0xff]  ;;  %v79_v22 = vld [vmem:[#allocation3 + $0x18] sm:$0xff] }
  0x4e   :  { %v86_v18 = vmul.f32 %v82_v14, %v78_v11  ;;  %v81_v23 = vld [vmem:[#allocation6 + $0x8] sm:$0xff]  ;;  %280 = vmatprep.subr.bf16.mxu1 %v275_v7  ;;  %276 = vmatprep.subr.bf16.mxu0 %v275_v7  ;;  %v104_v25 = vadd.f32 %v103_v20, %v102_v19  ;;  %v83_v26 = vld [vmem:[#allocation6 + $0x18] sm:$0xff]  ;;  %v244_v38 = vld [vmem:[%s557_s4] ss:$0 sm:$0xff]  ;;  %p385_p7 = por %p384_p6, %p383_p5 }
  0x4f   :  { %107 = vst.msk [vmem:[#allocation2 + $0x10] sm:$0xff] %vm88_vm0, %v101_v13  ;;  %v89_v24 = vsel %vm88_vm0, %v84_v15, 0.0  ;;  %v85_v27 = vmul.f32 %v81_v23, %v77_v21  ;;  %v87_v29 = vmul.f32 %v83_v26, %v79_v22 }
  0x50   :  { %v90_v28 = vsel %vm88_vm0, %v86_v18, 0.0  ;;  %108 = vst.msk [vmem:[#allocation2 + $0x18] sm:$0xff] %vm88_vm0, %v104_v25  ;;  %p386_p8 = pnand %p385_p7, %p379_p4 }
  0x51   :  { %v91_v30 = vadd.f32 %v90_v28, %v89_v24  ;;  %v92_v31 = vsel %vm88_vm0, %v85_v27, 0.0  ;;  %282 = vmatpush3.bf16.msra.mxu1 %v275_v7  ;;  %278 = vmatpush3.bf16.msra.mxu0 %v275_v7  ;;  %v93_v32 = vsel %vm88_vm0, %v87_v29, 0.0 }
  0x52   :  { %v94_v33 = vadd.f32 %v93_v32, %v92_v31 }
  0x53   :  { %105 = vst.msk [vmem:[#allocation2] sm:$0xff] %vm88_vm0, %v91_v30 }
  0x54   :  { %106 = vst.msk [vmem:[#allocation2 + $0x8] sm:$0xff] %vm88_vm0, %v94_v33 }
  0x56   :  { %v111_v34 = vld [vmem:[#allocation2 + $0x10] sm:$0xff] }
  0x57   :  { %268 = vmatprep.mubr.msk.f32.mxu1 %vm88_vm0, %v111_v34  ;;  %v112_v35 = vld [vmem:[#allocation2 + $0x18] sm:$0xff] }
  0x58   :  { %269 = vmatmul.mubr.msk.f32.vlgmr.msra.gmra.mrb[0].mxu1 %vm88_vm0, %v112_v35 }
  0x5a   :  { %v109_v36 = vld [vmem:[#allocation2] sm:$0xff] }
  0x5b   :  { %265 = vmatprep.mubr.msk.f32.mxu0 %vm88_vm0, %v109_v36  ;;  %v110_v37 = vld [vmem:[#allocation2 + $0x8] sm:$0xff] }
  0x5c   :  { %266 = vmatmul.mubr.msk.f32.vlgmr.msra.gmra.mrb[0].mxu0 %vm88_vm0, %v110_v37 }
 0x12b   :  { %v270_v39 = vpop.f32.mrb[0].mxu1 }
 0x12c   :  { %v218_v40 = vadd.f32 %v270_v39, %v244_v38  ;;  %v212_v41 = vpop.f32.mrb[1].mxu1 }
 0x12d   :  { %v213_v42 = vadd.f32 %v244_v38, %v212_v41 }
 0x12e   :  { %224 = vst [vmem:[#allocation11 + $0x18] sm:$0xff] %v218_v40 }
 0x12f   :  { %v267_v43 = vpop.f32.mrb[0].mxu0  ;;  %223 = vst [vmem:[#allocation11 + $0x10] sm:$0xff] %v213_v42 }
 0x130   :  { %v208_v44 = vadd.f32 %v267_v43, %v244_v38  ;;  %v202_v45 = vpop.f32.mrb[1].mxu0 }
 0x131   :  { %v203_v46 = vadd.f32 %v244_v38, %v202_v45 }
 0x132   :  { %222 = vst [vmem:[#allocation11 + $0x8] sm:$0xff] %v208_v44 }
 0x133   :  { %221 = vst [vmem:[#allocation11] sm:$0xff] %v203_v46 }
 0x134   :  { %389 = shalt.err (!%p386_p8)
}
 0x135   :  { %s390_s22 = scalar_lea.hbm %s558_s5, 512 }
 0x136   :  { %p391_p9 = scmp.ne.s32.totalorder %s558_s5, %s390_s22  ;;  %p394_p10 = scmp.lt.u32.totalorder %s390_s22, %s558_s5 }
 0x138   :  { %p396_p11 = pnand %p394_p10, %p391_p9 }
 0x13a   :  { %399 = shalt.err (!%p396_p11)
}
 0x13b   :  { %236 = dma.vmem_to_hbm [thread:$0]  %s231_s18, 512, %s558_s5, [#allocation5], %s410_s30, %s410_s30, %s411_s6  }
 0x13c   :  { %406 = dma.done.wait [#allocation5], 512  }
 0x13d   :  { %407 = vsyncadd [#allocation5], 4294966784 }
 0x13e   :  { %240 = vsyncpa [#allocation4], 1 }
 0x13f   :  { %241 = vsyncpa [#allocation7], 1 }
 0x140   :  { %242 = vsyncpa [#allocation10], 1 }
 0x141   :  { %243 = vsyncpa [#allocation5], 1 }

</bundles_post_ra>
